<compile_context>
chip_gen: v6e
topology: v6e:2x2x1
jax: 0.10.0
libtpu: 0.0.40
codegen_flags: <defaults>
</compile_context>

<pallas_src>
import functools
import math

import numpy as np
import jax
import jax.numpy as jnp
from jax import lax
from jax.experimental import pallas as pl
from jax.experimental.pallas import tpu as pltpu


def _learnable_sigmoid_kernel(x_ref, slope_ref, out_ref, *, beta, compute_dtype):
    # x_ref: [TM, F] tile, slope_ref: [1, F] (broadcast over rows).
    x = x_ref[...].astype(compute_dtype)
    s = slope_ref[...].astype(compute_dtype)        # [1, F] -> broadcasts over TM rows
    z = x * s                                       # VPU
    # lax.logistic keeps the transcendental work on the EUP slot (tanh-based
    # lowering, no f32 VPU divide) and matches torch.sigmoid semantics exactly.
    y = jnp.asarray(beta, compute_dtype) * lax.logistic(z)
    out_ref[...] = y.astype(out_ref.dtype)


def _is_v5e():
    try:
        kind = jax.devices()[0].device_kind.lower()
    except Exception:
        return False
    return ("v5 lite" in kind) or ("v5e" in kind) or ("v5litepod" in kind)


def _choose_tile_rows(M, F, itemsize, block_bytes=2 << 20):
    """Rows per block from a ~2 MiB byte budget; multiple of 8; >= 2 grid steps."""
    tm = max(8, (block_bytes // max(1, F * itemsize)) // 8 * 8)
    if M >= 16:
        # Cap at ceil(M/2) (rounded up to a multiple of 8) so the grid has at
        # least 2 steps -> both v7x TensorCores get work.  Harmless on v5e/v6e.
        half = (M + 1) // 2
        half8 = ((half + 7) // 8) * 8
        tm = min(tm, half8)
    if tm >= M:
        tm = M          # single full block (only reachable for tiny M)
    return tm


def learnable_sigmoid_forward(x, slope, beta=1.2):
    """x: [..., F] float, slope: [F] float  ->  beta * sigmoid(slope * x)."""
    orig_shape = x.shape
    F = orig_shape[-1]
    assert slope.shape == (F,), (slope.shape, F)

    x2 = x.reshape(-1, F)                           # [M, F], F on lanes
    M = x2.shape[0]
    slope2 = slope

    # Lane-density: if F is not a multiple of 128, fold rows into lanes so the
    # output last dim is lane-dense (unmasked vst) whenever the shapes allow.
    if F % 128 != 0:
        k = 128 // math.gcd(F, 128)
        if k > 1 and M % k == 0:
            x2 = x2.reshape(M // k, k * F)
            slope2 = jnp.tile(slope, k)
            M, F = M // k, k * F
        # else: keep full-F blocks; Pallas masks partial stores (correct, slower).

    itemsize = jnp.dtype(x.dtype).itemsize
    TM = _choose_tile_rows(M, F, itemsize)
    grid = (pl.cdiv(M, TM),)

    # bf16-native compute on chips with bf16 VPU/EUP; f32 otherwise.
    if x.dtype == jnp.bfloat16 and not _is_v5e():
        compute_dtype = jnp.bfloat16
    else:
        compute_dtype = jnp.float32

    # Double-buffered x + out blocks, the broadcast slope row, plus headroom.
    vmem_bytes = 4 * TM * F * itemsize + 4 * F * itemsize + (1 << 20)
    vmem_limit = int(min(max(vmem_bytes, 4 << 20), 100 << 20))

    cost = pl.CostEstimate(
        flops=3 * M * F,                            # scale, fma inside logistic, beta-scale
        transcendentals=2 * M * F,                  # exp/tanh + reciprocal-equivalent
        bytes_accessed=(2 * M * F + F) * itemsize,  # x in, y out, slope
    )

    out = pl.pallas_call(
        functools.partial(_learnable_sigmoid_kernel, beta=float(beta),
                          compute_dtype=compute_dtype),
        out_shape=jax.ShapeDtypeStruct((M, F), x.dtype),
        grid_spec=pltpu.PrefetchScalarGridSpec(
            num_scalar_prefetch=0,
            grid=grid,
            in_specs=[
                pl.BlockSpec((TM, F), lambda i: (i, 0)),   # x tile
                pl.BlockSpec((1, F), lambda i: (0, 0)),    # slope (same every step)
            ],
            out_specs=pl.BlockSpec((TM, F), lambda i: (i, 0)),
        ),
        compiler_params=pltpu.CompilerParams(
            dimension_semantics=("parallel",),      # rows independent -> megacore on v7x
            vmem_limit_bytes=vmem_limit,
        ),
        cost_estimate=cost,
    )(x2, slope2.reshape(1, F))

    return out.reshape(orig_shape)


def reference_forward(x, slope, beta=1.2):
    """Pure-JAX reference mirroring the PyTorch forward exactly."""
    return beta * jax.nn.sigmoid(slope * x)


if __name__ == "__main__":
    beta = 1.2
    key = jax.random.PRNGKey(0)

    # Test 1: shapes consistent with the module: x: [B, T, F], slope: [F].
    B, T, F = 4, 64, 256
    k1, k2, k3, k4 = jax.random.split(key, 4)
    x = jax.random.normal(k1, (B, T, F), jnp.float32)
    slope = 1.0 + 0.1 * jax.random.normal(k2, (F,), jnp.float32)

    out = jax.block_until_ready(learnable_sigmoid_forward(x, slope, beta))
    ref = reference_forward(x, slope, beta)
    assert out.shape == x.shape, out.shape
    np.testing.assert_allclose(np.asarray(out), np.asarray(ref), rtol=1e-5, atol=1e-5)

    # Test 2: F not a multiple of 128 and a ragged row count -> exercises the
    # lane-folding path and the pl.cdiv ragged last block.
    B2, T2, F2 = 5, 20, 64
    x2 = jax.random.normal(k3, (B2, T2, F2), jnp.float32)
    slope2 = 1.0 + 0.1 * jax.random.normal(k4, (F2,), jnp.float32)

    out2 = jax.block_until_ready(learnable_sigmoid_forward(x2, slope2, beta))
    ref2 = reference_forward(x2, slope2, beta)
    assert out2.shape == x2.shape, out2.shape
    np.testing.assert_allclose(np.asarray(out2), np.asarray(ref2), rtol=1e-5, atol=1e-5)

    print("KERNEL_OK")
</pallas_src>

<mosaic_0001>
module attributes {stable_mosaic.version = 11 : i64} {
  func.func @_learnable_sigmoid_kernel(%arg0: i32, %arg1: memref<128x256xf32, #tpu.memory_space<vmem>>, %arg2: memref<1x256xf32, #tpu.memory_space<vmem>>, %arg3: memref<128x256xf32, #tpu.memory_space<vmem>>) attributes {dimension_semantics = [#tpu.dimension_semantics<parallel>], iteration_bounds = array<i64: 2>, scalar_prefetch = 0 : i64, scratch_operands = 0 : i64, tpu.core_type = #tpu.core_type<tc>, window_params = [{transform_indices = @transform_0, window_bounds = array<i64: 128, 256>}, {pipeline_mode = #tpu.pipeline_mode<synchronous>, transform_indices = @transform_1, window_bounds = array<i64: 1, 256>}, {transform_indices = @transform_2, window_bounds = array<i64: 128, 256>}]} {
    %c0 = arith.constant 0 : index
    %c0_0 = arith.constant 0 : index
    %0 = vector.load %arg1[%c0, %c0_0] : memref<128x256xf32, #tpu.memory_space<vmem>>, vector<128x256xf32>
    %c0_1 = arith.constant 0 : index
    %c0_2 = arith.constant 0 : index
    %1 = vector.load %arg2[%c0_1, %c0_2] : memref<1x256xf32, #tpu.memory_space<vmem>>, vector<1x256xf32>
    %2 = vector.broadcast %1 : vector<1x256xf32> to vector<128x256xf32>
    %3 = arith.mulf %0, %2 : vector<128x256xf32>
    %4 = arith.negf %3 : vector<128x256xf32>
    %5 = math.exp %4 : vector<128x256xf32>
    %cst = arith.constant 1.000000e+00 : f32
    %6 = vector.broadcast %cst : f32 to vector<128x256xf32>
    %7 = arith.addf %6, %5 : vector<128x256xf32>
    %8 = arith.divf %6, %7 : vector<128x256xf32>
    %cst_3 = arith.constant 1.200000e+00 : f32
    %9 = vector.broadcast %cst_3 : f32 to vector<128x256xf32>
    %10 = arith.mulf %9, %8 : vector<128x256xf32>
    %c0_4 = arith.constant 0 : index
    %c0_5 = arith.constant 0 : index
    %11 = vector.load %arg3[%c0_4, %c0_5] : memref<128x256xf32, #tpu.memory_space<vmem>>, vector<128x256xf32>
    tpu.vector_store %arg3[%c0_4, %c0_5], %10 {strides = array<i32>} : memref<128x256xf32, #tpu.memory_space<vmem>>, vector<128x256xf32>,
    return
  }
  func.func @transform_0(%arg0: i32) -> (i32, i32) {
    %c0_i32 = arith.constant 0 : i32
    %c0_i32_0 = arith.constant 0 : i32
    return %arg0, %c0_i32 : i32, i32
  }
  func.func @transform_1(%arg0: i32) -> (i32, i32) {
    %c0_i32 = arith.constant 0 : i32
    %c0_i32_0 = arith.constant 0 : i32
    %c0_i32_1 = arith.constant 0 : i32
    return %c0_i32, %c0_i32_0 : i32, i32
  }
  func.func @transform_2(%arg0: i32) -> (i32, i32) {
    %c0_i32 = arith.constant 0 : i32
    %c0_i32_0 = arith.constant 0 : i32
    return %arg0, %c0_i32 : i32, i32
  }
}

</mosaic_0001>

<bundles_post_ra>
// kernel: tpu_custom_call.1
= control target key start
LH: loop header
LB: loop body
LE: loop exit
PB: predicated region body
PF: predicated region fallthrough
CT: control target
= control target key end

     0   :  { %7 = vsyncpa [#allocation3], 0  ;;  %s1287_s0 = inlined_call_operand.hbm [shape: f32[256,256], index: 0, kind: input, shape index: {}]   ;;  %s1288_s1 = inlined_call_operand.hbm [shape: f32[1,256], index: 1, kind: input, shape index: {}]   ;;  %s1289_s2 = inlined_call_operand.hbm [shape: f32[256,256], index: 2, kind: output, shape index: {}]  }
   0x1   :  { %9 = vsyncpa [#allocation3 + $0x1], 0 }
   0x2   :  { %10 = vsyncpa [#allocation6], 0 }
   0x3   :  { %11 = vsyncpa [#allocation4], 0 }
   0x4   :  { %13 = vsyncpa [#allocation4 + $0x1], 0  ;;  %s997_s9 = smov 0   ;;  %s999_s10 = smov 0  }
   0x5   :  { %s1001_s11 = smov 0   ;;  %s1003_s12 = smov 0  }
   0x6 LB: > { %s1018_s13 = sadd.s32 4294967295, %s973_s12   ;;  %s608_s14 = sadd.s32 4294967294, %s973_s12   ;;  %s973_s12 = sphi %s1003_s12, %s1312_s12   ;;  %s969_s11 = sphi %s1001_s11, %s1311_s11   ;;  %s965_s10 = sphi %s999_s10, %s1310_s10   ;;  %s961_s9 = sphi %s997_s9, %s1309_s9  }
   0x7   : > { %s1022_s15 = sadd.s32 1, %s973_s12   ;;  %s26_s16 = sadd.s32 1, %s969_s11 }
   0x8   : > { %s23_s17 = ssub.s32 %s973_s12, %s1022_s15  ;;  %p33_p0 = scmp.ne.s32.totalorder %s969_s11, %s965_s10 }
   0x9   : > { %p24_p1 = scmp.eq.s32.totalorder %s23_s17, 0  ;;  %p34_p2 = scmp.eq.s32.totalorder %s973_s12, 0 }
   0xa   : > { %p39_p3 = scmp.ne.s32.totalorder %s965_s10, %s961_s9  ;;  %p1290_p4 = scmp.eq.s32.totalorder %s1018_s13, 0 }
   0xb   : > { %s1034_s18 = scalar_select %p24_p1, %s969_s11, %s26_s16  }
   0xc   : > { %p1036_p5 = por %p34_p2, %p33_p0  ;;  %p1042_p6 = por %p1290_p4, %p39_p3 }
   0xd   : > { %p84_p7 = scmp.eq.s32.totalorder %s1018_s13, 1  ;;  %p90_p8 = scmp.eq.s32.totalorder %s608_s14, 1 }
   0xe   : > { %s1295_s20 = scalar_select %p1042_p6, 1, 0 }
   0xf   : > { %p609_p9 = scmp.ge.s32.totalorder %s973_s12, 1  ;;  %p97_p10 = scmp.lt.s32.totalorder %s973_s12, 3 }
  0x10   : > { %p1049_p11 = por %p84_p7, %p33_p0  ;;  %p1053_p12 = por %p90_p8, %p39_p3 }
  0x11   : > { %p1057_p13 = pnand %p609_p9, %p97_p10  ;;  %s975_s24 = smov [#allocation5]  }
  0x12   : > { %s1296_s21 = scalar_select %p1049_p11, 1, 0 }
  0x13   : > { %s1297_s22 = scalar_select %p1053_p12, 1, 0 }
  0x14   : > { %s1298_s23 = scalar_select %p1057_p13, 1, 0 }
  0x15   : > { %p670_p2 = pneg %p1057_p13  ;;  %s110_s25 = sshll.u32 %s975_s24, 4  ;;  %s111_s25 = int_to_ptr.vmem [resolvable:$true] %s110_s25 }
  0x16   : > { %p683_p4 = scmp.lt.s32.totalorder %s973_s12, 2  ;;  %p1299_p0 = scmp.eq.s32.totalorder %s1018_s13, 0 }
  0x17   : > { %s121_s27 = sand.u32 1, %s969_s11   ;;  %s862_s30 = scalar_lea.vmem %s111_s25, 32 }
  0x18   : > { %p1067_p7 = pnand %p670_p2, %p1299_p0  ;;  %p1074_p3 = pnand %p683_p4, %p1036_p5 }
  0x19   : > { %s612_s29 = sshll.u32 %s121_s27, 8  ;;  %p863_p9 = scmp.ne.s32.totalorder %s111_s25, %s862_s30 }
  0x1a   : > { %p853_p8 = pneg %p1067_p7  ;;  %p870_p12 = scmp.lt.s32.totalorder %s111_s25, %s111_s25 }
  0x1b   : > { %p871_p11 = scmp.lt.s32.totalorder %s862_s30, %s862_s30 }
  0x1c   : > { %p865_p10 = pnand %p863_p9, %p853_p8 }
  0x1d   : > { %p872_p2 = por %p871_p11, %p870_p12 }
  0x1e   : > { %p866_p1 = pneg %p865_p10 }
  0x20   : > { %p873_p0 = pnand %p872_p2, %p866_p1 }
  0x22   : > { %876 = shalt.err (!%p873_p0)
}
  0x23   : > { %673 = dma.hbm_to_vmem [thread:$0]  (!%p1067_p7), %s1288_s1, 32, %s111_s25, [#allocation6]  }
  0x24   : > { %s659_s5 = sshll.u32 %s973_s12, 12  ;;  %s125_s6 = scalar_lea.vmem [#allocation2], %s612_s29 }
  0x25   : > { %s133_s7 = sshll.u32 %s125_s6, 4  ;;  %s1089_s16 = scalar_lea.hbm %s1287_s0, %s659_s5  ;;  %s1091_s7 = int_to_ptr.vmem [resolvable:$true] %s133_s7 }
  0x26   : > { %s1093_s17 = scalar_lea.sflag [#allocation3], %s121_s27  ;;  %s877_s19 = scalar_lea.hbm %s1089_s16, 4096 }
  0x27   : > { %p878_p4 = scmp.ne.s32.totalorder %s1089_s16, %s877_s19  ;;  %p879_p5 = pneg %p1074_p3 }
  0x28   : > { %s882_s26 = scalar_lea.hbm %s1287_s0, 8192  ;;  %p883_p1 = scmp.lt.s32.totalorder %s1089_s16, %s1287_s0 }
  0x29   : > { %p880_p11 = pnand %p879_p5, %p878_p4  ;;  %p884_p7 = scmp.lt.s32.totalorder %s882_s26, %s877_s19 }
  0x2b   : > { %p881_p12 = pneg %p880_p11  ;;  %p885_p8 = por %p884_p7, %p883_p1 }
  0x2d   : > { %p886_p9 = pnand %p885_p8, %p881_p12 }
  0x2f   : > { %889 = shalt.err (!%p886_p9)
}
  0x30   : > { %s890_s27 = scalar_lea.vmem %s1091_s7, 4096  ;;  %s976_s3 = smov [#allocation2]  }
  0x31   : > { %p891_p10 = scmp.ne.s32.totalorder %s1091_s7, %s890_s27  ;;  %s895_s4 = sshll.u32 %s976_s3, 4  ;;  %s896_s4 = int_to_ptr.vmem [resolvable:$false] %s895_s4 }
  0x32   : > { %s897_s5 = scalar_lea.vmem %s896_s4, 8192  ;;  %p898_p4 = scmp.lt.s32.totalorder %s1091_s7, %s896_s4 }
  0x33   : > { %p893_p2 = pnand %p891_p10, %p879_p5  ;;  %p899_p11 = scmp.lt.s32.totalorder %s897_s5, %s890_s27 }
  0x35   : > { %p894_p0 = pneg %p893_p2  ;;  %p900_p6 = por %p899_p11, %p898_p4 }
  0x37   : > { %p901_p13 = pnand %p900_p6, %p894_p0 }
  0x39   : > { %904 = shalt.err (!%p901_p13)
}
  0x3a   : > { %s977_s6 = smov 256   ;;  %s978_s8 = smov 16  }
  0x3b   : > { %677 = dma.hbm_to_vmem [thread:$0]  (!%p1074_p3), %s1089_s16, 4096, %s1091_s7, %s1093_s17, %s977_s6, %s977_s6, %s978_s8  }
  0x3c   : > { %p1302_p5 = scmp.ne.s32.totalorder %s1298_s23, 0 }
  0x3d   : > { %s1117_s14 = sand.u32 (!%p1302_p5), 1, %s965_s10   ;;  %p1303_p6 = scmp.ne.s32.totalorder (!%p1302_p5), %s1295_s20, 0 }
  0x3e   : > { %145 = sbr.rel (%p1302_p5) target bundleno = 176 (0xb0), region = 28  ;;  %s617_s19 = sshll.u32 (!%p1302_p5), %s1117_s14, 8 }
  0x3f   : > { %s148_s24 = scalar_lea.sflag (!%p1302_p5), [#allocation3], %s1117_s14  ;;  %s1123_s25 = scalar_lea.vmem (!%p1302_p5), [#allocation2], %s617_s19 }
  0x43   : > { %948 = dma.done.wait (%p1303_p6), %s148_s24, 4096  }
  0x44   : > { %950 = vsyncadd (%p1303_p6), %s148_s24, 4294963200  ;;  %p1304_p13 = scmp.eq.s32.totalorder %s1018_s13, 0 }
  0x46   : > { %952 = dma.done.wait (%p1304_p13), [#allocation6], 32   ;;  %p1305_p3 = pmov %p1304_p13 }
  0x47   : > { %v212_v0 = vlaneseq  ;;  %v178_v4 = vld [vmem:[%s1123_s25] sm:$0xff]  ;;  %v179_v6 = vld [vmem:[%s1123_s25 + $0x8] sm:$0xff]  ;;  %v180_v9 = vld [vmem:[%s1123_s25 + $0x10] sm:$0xff]  ;;  %s1190_s20 = scalar_lea.vmem [#allocation7], %s617_s19  ;;  %s661_s23 = sshll.u32 %s1018_s13, 12 }
  0x48   : > { %954 = vsyncadd (%p1305_p3), [#allocation6], 4294967264  ;;  %v210_v5 = vld [vmem:[#allocation5] sm:$0x3]  ;;  %v181_v10 = vld [vmem:[%s1123_s25 + $0x18] sm:$0xff]  ;;  %s525_s28 = sshll.u32 %s1190_s20, 4  ;;  %s1239_s17 = scalar_lea.hbm %s1289_s2, %s661_s23  ;;  %s1241_s28 = int_to_ptr.vmem [resolvable:$true] %s525_s28 }
  0x49   : > { %v213_v1 = vshrl.u32 %v212_v0, 7  ;;  %v182_v11 = vld [vmem:[%s1123_s25 + $0x20] sm:$0xff]  ;;  %v183_v12 = vld [vmem:[%s1123_s25 + $0x28] sm:$0xff]  ;;  %v184_v13 = vld [vmem:[%s1123_s25 + $0x30] sm:$0xff]  ;;  %s511_s13 = scalar_lea.sflag [#allocation4], %s1117_s14  ;;  %s905_s26 = scalar_lea.vmem %s1241_s28, 4096 }
  0x4a   : > { %v185_v18 = vld [vmem:[%s1123_s25 + $0x38] sm:$0xff]  ;;  %v186_v21 = vld [vmem:[%s1123_s25 + $0x40] sm:$0xff]  ;;  %v187_v22 = vld [vmem:[%s1123_s25 + $0x48] sm:$0xff]  ;;  %p906_p12 = scmp.ne.s32.totalorder %s1241_s28, %s905_s26  ;;  %p1306_p1 = scmp.ne.s32.totalorder %s1296_s21, 0 }
  0x4b   : > { %v214_v2 = vsub.s32 0, %v213_v1  ;;  %v218_v3 = vsub.s32 1, %v213_v1  ;;  %v188_v29 = vld [vmem:[%s1123_s25 + $0x50] sm:$0xff]  ;;  %v189_v32 = vld [vmem:[%s1123_s25 + $0x58] sm:$0xff]  ;;  %v190_v35 = vld [vmem:[%s1123_s25 + $0x60] sm:$0xff]  ;;  %s979_s29 = smov [#allocation7]  }
  0x4c   : > { %v191_v38 = vld [vmem:[%s1123_s25 + $0x68] sm:$0xff]  ;;  %v192_v41 = vld [vmem:[%s1123_s25 + $0x70] sm:$0xff]  ;;  %v193_v44 = vld [vmem:[%s1123_s25 + $0x78] sm:$0xff]  ;;  %p907_p7 = pnand %p906_p12, %p1306_p1  ;;  %s909_s30 = sshll.u32 %s979_s29, 4  ;;  %s910_s30 = int_to_ptr.vmem [resolvable:$false] %s909_s30 }
  0x4d   : > { %v1135_v7 = vrot.slane %v210_v5, %v214_v2  ;;  %v1137_v8 = vrot.slane %v210_v5, %v218_v3  ;;  %s911_s27 = scalar_lea.vmem %s910_s30, 8192  ;;  %p912_p9 = scmp.lt.s32.totalorder %s1241_s28, %s910_s30 }
  0x4e   : > { %p908_p8 = pneg %p907_p7  ;;  %p913_p10 = scmp.lt.s32.totalorder %s911_s27, %s905_s26 }
  0x4f   : > { %v222_v14 = vmul.f32 %v1135_v7, %v178_v4  ;;  %v223_v15 = vmul.f32 %v1137_v8, %v179_v6  ;;  %v224_v16 = vmul.f32 %v1135_v7, %v180_v9  ;;  %v225_v17 = vmul.f32 %v1137_v8, %v181_v10  ;;  %v194_v10 = vld [vmem:[%s1123_s25 + $0x80] sm:$0xff] }
  0x50   : > { %v226_v19 = vmul.f32 %v1135_v7, %v182_v11  ;;  %v227_v20 = vmul.f32 %v1137_v8, %v183_v12  ;;  %v228_v26 = vmul.f32 %v1135_v7, %v184_v13  ;;  %v229_v28 = vmul.f32 %v1137_v8, %v185_v18  ;;  %v195_v13 = vld [vmem:[%s1123_s25 + $0x88] sm:$0xff]  ;;  %p914_p2 = por %p913_p10, %p912_p9 }
  0x51   : > { %v620_v23 = vmul.f32 -1.442695, %v222_v14  ;;  %v621_v24 = vmul.f32 -1.442695, %v223_v15  ;;  %v622_v25 = vmul.f32 -1.442695, %v224_v16  ;;  %v230_v31 = vmul.f32 %v1135_v7, %v186_v21 }
  0x52   : > { %v623_v27 = vmul.f32 -1.442695, %v225_v17  ;;  %v624_v30 = vmul.f32 -1.442695, %v226_v19  ;;  %v625_v33 = vmul.f32 -1.442695, %v227_v20  ;;  %v231_v34 = vmul.f32 %v1137_v8, %v187_v22  ;;  %p915_p0 = pnand %p914_p2, %p908_p8 }
  0x53   : > { %723 = vpow2.f32 %v620_v23  ;;  %v626_v36 = vmul.f32 -1.442695, %v228_v26  ;;  %v232_v37 = vmul.f32 %v1135_v7, %v188_v29  ;;  %v627_v39 = vmul.f32 -1.442695, %v229_v28  ;;  %v196_v16 = vld [vmem:[%s1123_s25 + $0x90] sm:$0xff]  ;;  %v197_v20 = vld [vmem:[%s1123_s25 + $0x98] sm:$0xff] }
  0x54   : > { %725 = vpow2.f32 %v621_v24  ;;  %v233_v40 = vmul.f32 %v1137_v8, %v189_v32  ;;  %v628_v42 = vmul.f32 -1.442695, %v230_v31  ;;  %v234_v43 = vmul.f32 %v1135_v7, %v190_v35  ;;  %v198_v24 = vld [vmem:[%s1123_s25 + $0xa0] sm:$0xff]  ;;  %v199_v28 = vld [vmem:[%s1123_s25 + $0xa8] sm:$0xff]  ;;  %v200_v32 = vld [vmem:[%s1123_s25 + $0xb0] sm:$0xff] }
  0x55   : > { %727 = vpow2.f32 %v622_v25  ;;  %v629_v45 = vmul.f32 -1.442695, %v231_v34  ;;  %v235_v46 = vmul.f32 %v1137_v8, %v191_v38  ;;  %v630_v47 = vmul.f32 -1.442695, %v232_v37  ;;  %v201_v37 = vld [vmem:[%s1123_s25 + $0xb8] sm:$0xff] }
  0x56   : > { %729 = vpow2.f32 %v623_v27  ;;  %v236_v48 = vmul.f32 %v1135_v7, %v192_v41  ;;  %v631_v49 = vmul.f32 -1.442695, %v233_v40  ;;  %v237_v50 = vmul.f32 %v1137_v8, %v193_v44 }
  0x57   : > { %731 = vpow2.f32 %v624_v30  ;;  %v632_v51 = vmul.f32 -1.442695, %v234_v43  ;;  %v633_v52 = vmul.f32 -1.442695, %v235_v46  ;;  %v238_v19 = vmul.f32 %v1135_v7, %v194_v10  ;;  %v208_v10 = vld [vmem:[%s1123_s25 + $0xf0] sm:$0xff] }
  0x58   : > { %733 = vpow2.f32 %v625_v33  ;;  %v634_v53 = vmul.f32 -1.442695, %v236_v48  ;;  %v635_v54 = vmul.f32 -1.442695, %v237_v50  ;;  %v239_v23 = vmul.f32 %v1137_v8, %v195_v13 }
  0x59   : > { %735 = vpow2.f32 %v626_v36  ;;  %v240_v27 = vmul.f32 %v1135_v7, %v196_v16  ;;  %v241_v31 = vmul.f32 %v1137_v8, %v197_v20  ;;  %v636_v35 = vmul.f32 -1.442695, %v238_v19 }
  0x5a   : > { %737 = vpow2.f32 %v627_v39  ;;  %v242_v36 = vmul.f32 %v1135_v7, %v198_v24  ;;  %v637_v40 = vmul.f32 -1.442695, %v239_v23  ;;  %v243_v41 = vmul.f32 %v1137_v8, %v199_v28 }
  0x5b   : > { %739 = vpow2.f32 %v628_v42  ;;  %v202_v42 = vld [vmem:[%s1123_s25 + $0xc0] sm:$0xff]  ;;  %v244_v46 = vmul.f32 %v1135_v7, %v200_v32  ;;  %v639_v50 = vmul.f32 -1.442695, %v241_v31  ;;  %v252_v23 = vmul.f32 %v1135_v7, %v208_v10 }
  0x5c   : > { %741 = vpow2.f32 %v629_v45  ;;  %v638_v45 = vmul.f32 -1.442695, %v240_v27 }
  0x5d   : > { %743 = vpow2.f32 %v630_v47  ;;  %v203_v47 = vld [vmem:[%s1123_s25 + $0xc8] sm:$0xff] }
  0x5e   : > { %745 = vpow2.f32 %v631_v49 }
  0x5f   : > { %747 = vpow2.f32 %v632_v51  ;;  %v245_v51 = vmul.f32 %v1137_v8, %v201_v37 }
  0x60   : > { %v724_v55 = vpop.eup %723  ;;  %749 = vpow2.f32 %v633_v52  ;;  %v204_v52 = vld [vmem:[%s1123_s25 + $0xd0] sm:$0xff] }
  0x61   : > { %v726_v56 = vpop.eup %725  ;;  %v350_v57 = vadd.f32 1.0, %v724_v55  ;;  %751 = vpow2.f32 %v634_v53  ;;  %v640_v55 = vmul.f32 -1.442695, %v242_v36 }
  0x62   : > { %v728_v58 = vpop.eup %727  ;;  %v351_v59 = vadd.f32 1.0, %v726_v56  ;;  %753 = vpow2.f32 %v635_v54  ;;  %v246_v56 = vmul.f32 %v1135_v7, %v202_v42 }
  0x63   : > { %v730_v60 = vpop.eup %729  ;;  %755 = vrcp.f32 %v350_v57  ;;  %v352_v61 = vadd.f32 1.0, %v728_v58  ;;  %v205_v57 = vld [vmem:[%s1123_s25 + $0xd8] sm:$0xff] }
  0x64   : > { %v732_v62 = vpop.eup %731  ;;  %757 = vrcp.f32 %v351_v59  ;;  %v353_v63 = vadd.f32 1.0, %v730_v60  ;;  %v641_v60 = vmul.f32 -1.442695, %v243_v41  ;;  %v644_v13 = vmul.f32 -1.442695, %v246_v56 }
  0x65   : > { %v734_v0 = vpop.eup %733  ;;  %759 = vrcp.f32 %v352_v61  ;;  %v354_v1 = vadd.f32 1.0, %v732_v62  ;;  %v247_v61 = vmul.f32 %v1137_v8, %v203_v47  ;;  %v206_v62 = vld [vmem:[%s1123_s25 + $0xe0] sm:$0xff] }
  0x66   : > { %v736_v2 = vpop.eup %735  ;;  %761 = vrcp.f32 %v353_v63  ;;  %v355_v3 = vadd.f32 1.0, %v734_v0 }
  0x67   : > { %v738_v4 = vpop.eup %737  ;;  %763 = vrcp.f32 %v354_v1  ;;  %v356_v5 = vadd.f32 1.0, %v736_v2  ;;  %v642_v1 = vmul.f32 -1.442695, %v244_v46  ;;  %v248_v2 = vmul.f32 %v1135_v7, %v204_v52 }
  0x68   : > { %v740_v6 = vpop.eup %739  ;;  %765 = vrcp.f32 %v355_v3  ;;  %v357_v9 = vadd.f32 1.0, %v738_v4  ;;  %v207_v3 = vld [vmem:[%s1123_s25 + $0xe8] sm:$0xff] }
  0x69   : > { %v742_v11 = vpop.eup %741  ;;  %767 = vrcp.f32 %v356_v5  ;;  %v358_v12 = vadd.f32 1.0, %v740_v6  ;;  %v643_v6 = vmul.f32 -1.442695, %v245_v51  ;;  %v251_v19 = vmul.f32 %v1137_v8, %v207_v3 }
  0x6a   : > { %v744_v14 = vpop.eup %743  ;;  %769 = vrcp.f32 %v357_v9  ;;  %v359_v15 = vadd.f32 1.0, %v742_v11  ;;  %v249_v9 = vmul.f32 %v1137_v8, %v205_v57 }
  0x6b   : > { %v746_v17 = vpop.eup %745  ;;  %771 = vrcp.f32 %v358_v12  ;;  %v360_v18 = vadd.f32 1.0, %v744_v14  ;;  %v250_v14 = vmul.f32 %v1135_v7, %v206_v62  ;;  %v649_v7 = vmul.f32 -1.442695, %v251_v19 }
  0x6c   : > { %v748_v21 = vpop.eup %747  ;;  %773 = vrcp.f32 %v359_v15  ;;  %v361_v22 = vadd.f32 1.0, %v746_v17  ;;  %v209_v15 = vld [vmem:[%s1123_s25 + $0xf8] sm:$0xff] }
  0x6d   : > { %v750_v25 = vpop.eup %749  ;;  %775 = vrcp.f32 %v360_v18  ;;  %v362_v26 = vadd.f32 1.0, %v748_v21  ;;  %v645_v18 = vmul.f32 -1.442695, %v247_v61  ;;  %v253_v27 = vmul.f32 %v1137_v8, %v209_v15 }
  0x6e   : > { %v752_v29 = vpop.eup %751  ;;  %777 = vrcp.f32 %v361_v22  ;;  %v363_v30 = vadd.f32 1.0, %v750_v25  ;;  %v646_v22 = vmul.f32 -1.442695, %v248_v2 }
  0x6f   : > { %v754_v33 = vpop.eup %753  ;;  %779 = vrcp.f32 %v362_v26  ;;  %v364_v34 = vadd.f32 1.0, %v752_v29  ;;  %v647_v26 = vmul.f32 -1.442695, %v249_v9  ;;  %v651_v37 = vmul.f32 -1.442695, %v253_v27 }
  0x70   : > { %v756_v38 = vpop.eup %755  ;;  %781 = vrcp.f32 %v363_v30  ;;  %v365_v39 = vadd.f32 1.0, %v754_v33  ;;  %v648_v30 = vmul.f32 -1.442695, %v250_v14 }
  0x71   : > { %v758_v43 = vpop.eup %757  ;;  %v446_v44 = vmul.f32 1.2, %v756_v38  ;;  %783 = vrcp.f32 %v364_v34 }
  0x72   : > { %v760_v48 = vpop.eup %759  ;;  %v447_v49 = vmul.f32 1.2, %v758_v43  ;;  %785 = vrcp.f32 %v365_v39 }
  0x73   : > { %v762_v53 = vpop.eup %761  ;;  %478 = vst [vmem:[%s1190_s20] sm:$0xff] %v446_v44  ;;  %v448_v54 = vmul.f32 1.2, %v760_v48  ;;  %787 = vpow2.f32 %v636_v35  ;;  %v650_v35 = vmul.f32 -1.442695, %v252_v23 }
  0x74   : > { %v764_v58 = vpop.eup %763  ;;  %479 = vst [vmem:[%s1190_s20 + $0x8] sm:$0xff] %v447_v49  ;;  %v449_v59 = vmul.f32 1.2, %v762_v53  ;;  %789 = vpow2.f32 %v637_v40 }
  0x75   : > { %v766_v63 = vpop.eup %765  ;;  %480 = vst [vmem:[%s1190_s20 + $0x10] sm:$0xff] %v448_v54  ;;  %v450_v0 = vmul.f32 1.2, %v764_v58  ;;  %791 = vpow2.f32 %v638_v45 }
  0x76   : > { %v768_v4 = vpop.eup %767  ;;  %481 = vst [vmem:[%s1190_s20 + $0x18] sm:$0xff] %v449_v59  ;;  %v451_v5 = vmul.f32 1.2, %v766_v63  ;;  %793 = vpow2.f32 %v639_v50 }
  0x77   : > { %v770_v11 = vpop.eup %769  ;;  %482 = vst [vmem:[%s1190_s20 + $0x20] sm:$0xff] %v450_v0  ;;  %v452_v12 = vmul.f32 1.2, %v768_v4  ;;  %795 = vpow2.f32 %v640_v55 }
  0x78   : > { %v772_v16 = vpop.eup %771  ;;  %483 = vst [vmem:[%s1190_s20 + $0x28] sm:$0xff] %v451_v5  ;;  %v453_v17 = vmul.f32 1.2, %v770_v11  ;;  %797 = vpow2.f32 %v641_v60 }
  0x79   : > { %v774_v20 = vpop.eup %773  ;;  %484 = vst [vmem:[%s1190_s20 + $0x30] sm:$0xff] %v452_v12  ;;  %v454_v21 = vmul.f32 1.2, %v772_v16  ;;  %799 = vpow2.f32 %v642_v1 }
  0x7a   : > { %v776_v24 = vpop.eup %775  ;;  %485 = vst [vmem:[%s1190_s20 + $0x38] sm:$0xff] %v453_v17  ;;  %v455_v25 = vmul.f32 1.2, %v774_v20  ;;  %801 = vpow2.f32 %v643_v6 }
  0x7b   : > { %v778_v28 = vpop.eup %777  ;;  %486 = vst [vmem:[%s1190_s20 + $0x40] sm:$0xff] %v454_v21  ;;  %v456_v29 = vmul.f32 1.2, %v776_v24  ;;  %803 = vpow2.f32 %v644_v13 }
  0x7c   : > { %v780_v31 = vpop.eup %779  ;;  %487 = vst [vmem:[%s1190_s20 + $0x48] sm:$0xff] %v455_v25  ;;  %v457_v32 = vmul.f32 1.2, %v778_v28  ;;  %805 = vpow2.f32 %v645_v18 }
  0x7d   : > { %v782_v33 = vpop.eup %781  ;;  %488 = vst [vmem:[%s1190_s20 + $0x50] sm:$0xff] %v456_v29  ;;  %v458_v34 = vmul.f32 1.2, %v780_v31  ;;  %807 = vpow2.f32 %v646_v22 }
  0x7e   : > { %v784_v8 = vpop.eup %783  ;;  %489 = vst [vmem:[%s1190_s20 + $0x58] sm:$0xff] %v457_v32  ;;  %v459_v36 = vmul.f32 1.2, %v782_v33  ;;  %809 = vpow2.f32 %v647_v26 }
  0x7f   : > { %v786_v38 = vpop.eup %785  ;;  %490 = vst [vmem:[%s1190_s20 + $0x60] sm:$0xff] %v458_v34  ;;  %v460_v39 = vmul.f32 1.2, %v784_v8  ;;  %811 = vpow2.f32 %v648_v30 }
  0x80   : > { %v788_v40 = vpop.eup %787  ;;  %491 = vst [vmem:[%s1190_s20 + $0x68] sm:$0xff] %v459_v36  ;;  %v461_v41 = vmul.f32 1.2, %v786_v38  ;;  %813 = vpow2.f32 %v649_v7 }
  0x81   : > { %v790_v42 = vpop.eup %789  ;;  %492 = vst [vmem:[%s1190_s20 + $0x70] sm:$0xff] %v460_v39  ;;  %v366_v43 = vadd.f32 1.0, %v788_v40  ;;  %815 = vpow2.f32 %v650_v35 }
  0x82   : > { %v792_v44 = vpop.eup %791  ;;  %493 = vst [vmem:[%s1190_s20 + $0x78] sm:$0xff] %v461_v41  ;;  %v367_v45 = vadd.f32 1.0, %v790_v42  ;;  %817 = vpow2.f32 %v651_v37 }
  0x83   : > { %v794_v46 = vpop.eup %793  ;;  %819 = vrcp.f32 %v366_v43  ;;  %v368_v47 = vadd.f32 1.0, %v792_v44 }
  0x84   : > { %v796_v48 = vpop.eup %795  ;;  %821 = vrcp.f32 %v367_v45  ;;  %v369_v49 = vadd.f32 1.0, %v794_v46 }
  0x85   : > { %v798_v50 = vpop.eup %797  ;;  %823 = vrcp.f32 %v368_v47  ;;  %v370_v51 = vadd.f32 1.0, %v796_v48 }
  0x86   : > { %v800_v52 = vpop.eup %799  ;;  %825 = vrcp.f32 %v369_v49  ;;  %v371_v53 = vadd.f32 1.0, %v798_v50 }
  0x87   : > { %v802_v54 = vpop.eup %801  ;;  %827 = vrcp.f32 %v370_v51  ;;  %v372_v55 = vadd.f32 1.0, %v800_v52 }
  0x88   : > { %v804_v56 = vpop.eup %803  ;;  %829 = vrcp.f32 %v371_v53  ;;  %v373_v57 = vadd.f32 1.0, %v802_v54 }
  0x89   : > { %v806_v58 = vpop.eup %805  ;;  %831 = vrcp.f32 %v372_v55  ;;  %v374_v59 = vadd.f32 1.0, %v804_v56 }
  0x8a   : > { %v808_v60 = vpop.eup %807  ;;  %833 = vrcp.f32 %v373_v57  ;;  %v375_v61 = vadd.f32 1.0, %v806_v58 }
  0x8b   : > { %v810_v62 = vpop.eup %809  ;;  %835 = vrcp.f32 %v374_v59  ;;  %v376_v63 = vadd.f32 1.0, %v808_v60 }
  0x8c   : > { %v812_v0 = vpop.eup %811  ;;  %837 = vrcp.f32 %v375_v61  ;;  %v377_v1 = vadd.f32 1.0, %v810_v62 }
  0x8d   : > { %v814_v2 = vpop.eup %813  ;;  %839 = vrcp.f32 %v376_v63  ;;  %v378_v3 = vadd.f32 1.0, %v812_v0 }
  0x8e   : > { %v816_v4 = vpop.eup %815  ;;  %841 = vrcp.f32 %v377_v1  ;;  %v379_v5 = vadd.f32 1.0, %v814_v2 }
  0x8f   : > { %v818_v6 = vpop.eup %817  ;;  %843 = vrcp.f32 %v378_v3  ;;  %v380_v9 = vadd.f32 1.0, %v816_v4 }
  0x90   : > { %v820_v10 = vpop.eup %819  ;;  %845 = vrcp.f32 %v379_v5  ;;  %v381_v11 = vadd.f32 1.0, %v818_v6 }
  0x91   : > { %v822_v12 = vpop.eup %821  ;;  %v462_v13 = vmul.f32 1.2, %v820_v10  ;;  %847 = vrcp.f32 %v380_v9 }
  0x92   : > { %v824_v14 = vpop.eup %823  ;;  %v463_v15 = vmul.f32 1.2, %v822_v12  ;;  %849 = vrcp.f32 %v381_v11 }
  0x93   : > { %v826_v16 = vpop.eup %825  ;;  %494 = vst [vmem:[%s1190_s20 + $0x80] sm:$0xff] %v462_v13  ;;  %v464_v17 = vmul.f32 1.2, %v824_v14 }
  0x94   : > { %v828_v18 = vpop.eup %827  ;;  %495 = vst [vmem:[%s1190_s20 + $0x88] sm:$0xff] %v463_v15  ;;  %v465_v19 = vmul.f32 1.2, %v826_v16 }
  0x95   : > { %v830_v20 = vpop.eup %829  ;;  %496 = vst [vmem:[%s1190_s20 + $0x90] sm:$0xff] %v464_v17  ;;  %v466_v21 = vmul.f32 1.2, %v828_v18 }
  0x96   : > { %v832_v22 = vpop.eup %831  ;;  %497 = vst [vmem:[%s1190_s20 + $0x98] sm:$0xff] %v465_v19  ;;  %v467_v23 = vmul.f32 1.2, %v830_v20 }
  0x97   : > { %v834_v24 = vpop.eup %833  ;;  %498 = vst [vmem:[%s1190_s20 + $0xa0] sm:$0xff] %v466_v21  ;;  %v468_v25 = vmul.f32 1.2, %v832_v22 }
  0x98   : > { %v836_v26 = vpop.eup %835  ;;  %499 = vst [vmem:[%s1190_s20 + $0xa8] sm:$0xff] %v467_v23  ;;  %v469_v27 = vmul.f32 1.2, %v834_v24 }
  0x99   : > { %v838_v28 = vpop.eup %837  ;;  %500 = vst [vmem:[%s1190_s20 + $0xb0] sm:$0xff] %v468_v25  ;;  %v470_v29 = vmul.f32 1.2, %v836_v26 }
  0x9a   : > { %v840_v30 = vpop.eup %839  ;;  %501 = vst [vmem:[%s1190_s20 + $0xb8] sm:$0xff] %v469_v27  ;;  %v471_v31 = vmul.f32 1.2, %v838_v28 }
  0x9b   : > { %v842_v32 = vpop.eup %841  ;;  %502 = vst [vmem:[%s1190_s20 + $0xc0] sm:$0xff] %v470_v29  ;;  %v472_v7 = vmul.f32 1.2, %v840_v30 }
  0x9c   : > { %v844_v33 = vpop.eup %843  ;;  %503 = vst [vmem:[%s1190_s20 + $0xc8] sm:$0xff] %v471_v31  ;;  %v473_v34 = vmul.f32 1.2, %v842_v32 }
  0x9d   : > { %v846_v35 = vpop.eup %845  ;;  %504 = vst [vmem:[%s1190_s20 + $0xd0] sm:$0xff] %v472_v7  ;;  %v474_v8 = vmul.f32 1.2, %v844_v33 }
  0x9e   : > { %v848_v36 = vpop.eup %847  ;;  %505 = vst [vmem:[%s1190_s20 + $0xd8] sm:$0xff] %v473_v34  ;;  %v475_v37 = vmul.f32 1.2, %v846_v35 }
  0x9f   : > { %v850_v38 = vpop.eup %849  ;;  %506 = vst [vmem:[%s1190_s20 + $0xe0] sm:$0xff] %v474_v8  ;;  %v476_v39 = vmul.f32 1.2, %v848_v36 }
  0xa0   : > { %507 = vst [vmem:[%s1190_s20 + $0xe8] sm:$0xff] %v475_v37  ;;  %v477_v40 = vmul.f32 1.2, %v850_v38 }
  0xa1   : > { %508 = vst [vmem:[%s1190_s20 + $0xf0] sm:$0xff] %v476_v39 }
  0xa2   : > { %509 = vst [vmem:[%s1190_s20 + $0xf8] sm:$0xff] %v477_v40 }
  0xa3   : > { %918 = shalt.err (!%p915_p0)
}
  0xa4   : > { %s919_s3 = scalar_lea.hbm %s1239_s17, 4096  ;;  %s923_s6 = scalar_lea.hbm %s1289_s2, 8192 }
  0xa5   : > { %p920_p4 = scmp.ne.s32.totalorder %s1239_s17, %s919_s3  ;;  %p924_p6 = scmp.lt.s32.totalorder %s1239_s17, %s1289_s2 }
  0xa6   : > { %p925_p13 = scmp.lt.s32.totalorder %s923_s6, %s919_s3 }
  0xa7   : > { %p921_p11 = pnand %p920_p4, %p1306_p1 }
  0xa8   : > { %p926_p3 = por %p925_p13, %p924_p6 }
  0xa9   : > { %p922_p5 = pneg %p921_p11 }
  0xab   : > { %p927_p12 = pnand %p926_p3, %p922_p5 }
  0xad   : > { %930 = shalt.err (!%p927_p12)
}
  0xae   : > { %s980_s24 = smov 256   ;;  %s981_s25 = smov 16  }
  0xaf   : > { %668 = dma.vmem_to_hbm [thread:$0]  (%p1306_p1), %s1241_s28, 4096, %s1239_s17, %s511_s13, %s980_s24, %s980_s24, %s981_s25  }
  0xb0 PF: > { %s540_s20 = sand.u32 1, %s961_s9   ;;  %p1307_p7 = scmp.ne.s32.totalorder %s1297_s22, 0 }
  0xb1   : > { %p1308_p8 = scmp.ge.s32.totalorder %s973_s12, 2  ;;  %s541_s23 = scalar_lea.sflag [#allocation4], %s540_s20 }
  0xb3   : > { %p679_p9 = pnand %p1308_p8, %p1307_p7 }
  0xb5   : > { %p680_p10 = pneg %p679_p9 }
  0xb7   : > { %956 = dma.done.wait (%p680_p10), %s541_s23, 4096  }
  0xb8   : > { %958 = vsyncadd (%p680_p10), %s541_s23, 4294963200  ;;  %p16_p2 = scmp.ge.s32.totalorder %s1022_s15, 4   ;;  %s1309_s9 = smov %s965_s10 }
  0xb9   : > { %s1310_s10 = smov %s969_s11  ;;  %s1311_s11 = smov %s1034_s18 }
  0xba   : > { %s1312_s12 = smov %s1022_s15  ;;  %18 = sbr.rel (!%p16_p2) target bundleno = 6 (0x6), region = 77 }
  0xbf   :  { %546 = vsyncpa [#allocation3], 1 }
  0xc0   :  { %548 = vsyncpa [#allocation3 + $0x1], 1 }
  0xc1   :  { %549 = vsyncpa [#allocation6], 1 }
  0xc2   :  { %550 = vsyncpa [#allocation4], 1 }
  0xc3   :  { %552 = vsyncpa [#allocation4 + $0x1], 1 }

</bundles_post_ra>
